<compile_context>
chip_gen: v7x
topology: tpu7x:2x2x1
jax: 0.10.0
libtpu: 0.0.40
codegen_flags: <defaults>
</compile_context>

<pallas_src>
import jax
import jax.numpy as jnp
from jax.experimental import pallas as pl
from jax.experimental.pallas import tpu as pltpu


def _round_up(x, m):
    return (x + m - 1) // m * m


def _actor_kernel(scale_ref, x_ref, w1_ref, b1_ref, w2_ref, b2_ref,
                  w3_ref, b3_ref, o_ref):
    # MXU operand dtype follows the stored weight dtype (bf16 by default);
    # accumulation is always f32.  Element-wise math stays f32.
    cdt = w1_ref.dtype
    x = x_ref[...].astype(cdt)

    # Layer 1: (TB, S) @ (S, 512) + (1, 512) -> ReLU
    h = jnp.dot(x, w1_ref[...], preferred_element_type=jnp.float32) + b1_ref[...]
    h = jnp.maximum(h, 0.0)

    # Layer 2: (TB, 512) @ (512, 384) + (1, 384) -> ReLU
    h = jnp.dot(h.astype(cdt), w2_ref[...],
                preferred_element_type=jnp.float32) + b2_ref[...]
    h = jnp.maximum(h, 0.0)

    # Layer 3: (TB, 384) @ (384, 128) + (1, 128)
    h = jnp.dot(h.astype(cdt), w3_ref[...],
                preferred_element_type=jnp.float32) + b3_ref[...]

    # Slice the f32 result down to the true action_dim BEFORE tanh/store so
    # padded-column values can never leak and only real action bytes hit HBM.
    a = o_ref.shape[1]
    o_ref[...] = (jnp.tanh(h[:, :a]) * scale_ref[0, 0]).astype(o_ref.dtype)


def init_actor_params(key, state_dim, action_dim):
    """PyTorch nn.Linear-style init (uniform +/- 1/sqrt(fan_in)); logical shapes."""
    def linear(key, fan_in, fan_out):
        kw, kb = jax.random.split(key)
        bound = 1.0 / jnp.sqrt(fan_in)
        w = jax.random.uniform(kw, (fan_in, fan_out), jnp.float32, -bound, bound)
        b = jax.random.uniform(kb, (1, fan_out), jnp.float32, -bound, bound)
        return w, b

    k1, k2, k3 = jax.random.split(key, 3)
    w1, b1 = linear(k1, state_dim, 400)
    w2, b2 = linear(k2, 400, 300)
    w3, b3 = linear(k3, 300, action_dim)
    return (w1, b1, w2, b2, w3, b3)


def prepare_actor_params(params, weight_dtype=jnp.bfloat16):
    """Zero-pad hidden/action dims to multiples of 128 and cast weights.

    Zero padding leaves results unchanged (ReLU(0)=0; zero rows/cols add 0).
    weight_dtype=bf16 (default) halves weight DMA/VMEM and uses the native
    bf16 MXU on all gens; it is NOT bit-exact vs f32 (~1e-2 rel error), which
    is acceptable for TD3.  Pass jnp.float32 for a bit-exact forward.
    Biases always stay f32 (added post-matmul in f32).
    """
    w1, b1, w2, b2, w3, b3 = params
    s = w1.shape[0]
    H1 = _round_up(w1.shape[1], 128)   # 400 -> 512
    H2 = _round_up(w2.shape[1], 128)   # 300 -> 384
    A = _round_up(w3.shape[1], 128)    # action_dim -> 128

    def pad2(x, r, c):
        return jnp.pad(x, ((0, r - x.shape[0]), (0, c - x.shape[1])))

    return (pad2(w1, s, H1).astype(weight_dtype), pad2(b1, 1, H1),
            pad2(w2, H1, H2).astype(weight_dtype), pad2(b2, 1, H2),
            pad2(w3, H2, A).astype(weight_dtype), pad2(b3, 1, A))


def actor_forward(state, padded_params, max_action, action_dim, *,
                  block_b=1024, out_dtype=jnp.float32):
    """state: (B, state_dim) f32. Returns (B, action_dim) in `out_dtype`.

    Use out_dtype=jnp.bfloat16 to halve the output HBM stream if the consumer
    (critic / replay buffer) tolerates it.
    """
    w1, b1, w2, b2, w3, b3 = padded_params
    B, S = state.shape
    H1, H2, A_pad = w1.shape[1], w2.shape[1], w3.shape[1]

    block_b = _round_up(block_b, 8)
    if B <= 256:
        # Small acting/eval batches: a single grid step is cheapest.
        TB = min(B, block_b)
    else:
        # Guarantee >= 2 grid steps so ("parallel",) can shard the batch
        # across both TensorCores on v7x (harmless on 1-TC v5e/v6e).
        TB = min(block_b, _round_up(pl.cdiv(B, 2), 8))
    grid = (pl.cdiv(B, TB),)

    scale = jnp.full((1, 1), max_action, jnp.float32)

    def resident(shape):
        # Constant index_map: DMA'd once, stays VMEM-resident across the grid.
        return pl.BlockSpec(shape, lambda i: (0, 0))

    def nbytes(a):
        return int(a.size) * a.dtype.itemsize

    cost = pl.CostEstimate(
        flops=2 * B * (S * H1 + H1 * H2 + H2 * A_pad),
        transcendentals=B * action_dim,
        bytes_accessed=(B * S * state.dtype.itemsize
                        + B * action_dim * jnp.dtype(out_dtype).itemsize
                        + sum(nbytes(a) for a in padded_params)),
    )

    out = pl.pallas_call(
        _actor_kernel,
        out_shape=jax.ShapeDtypeStruct((B, action_dim), out_dtype),
        grid=grid,
        in_specs=[
            pl.BlockSpec(memory_space=pltpu.MemorySpace.SMEM),   # max_action
            pl.BlockSpec((TB, S), lambda i: (i, 0)),             # state tile
            resident(w1.shape), resident(b1.shape),
            resident(w2.shape), resident(b2.shape),
            resident(w3.shape), resident(b3.shape),
        ],
        # Unpadded output block: last dim equals the full array dim, so the
        # (8,128) rule is satisfied; the masked store is cheap and output
        # HBM bytes drop 16x vs the previous 128-wide padded output.
        out_specs=pl.BlockSpec((TB, action_dim), lambda i: (i, 0)),
        compiler_params=pltpu.CompilerParams(
            dimension_semantics=("parallel",)),
        cost_estimate=cost,
    )(scale, state, w1, b1, w2, b2, w3, b3)

    return out


def actor_reference(state, params, max_action):
    w1, b1, w2, b2, w3, b3 = params
    h = jnp.maximum(state @ w1 + b1, 0.0)
    h = jnp.maximum(h @ w2 + b2, 0.0)
    return jnp.tanh(h @ w3 + b3) * max_action


if __name__ == "__main__":
    key = jax.random.PRNGKey(0)
    k_params, k_state, k_state2 = jax.random.split(key, 3)

    batch = 8
    state_dim = 32
    action_dim = 8
    max_action = 2.0

    params = init_actor_params(k_params, state_dim, action_dim)
    p_f32 = prepare_actor_params(params, weight_dtype=jnp.float32)   # bit-exact
    p_bf16 = prepare_actor_params(params)                            # default fast path

    # --- small-batch f32 check (bit-exact vs reference) ---
    state = jax.random.normal(k_state, (batch, state_dim), jnp.float32)
    out = actor_forward(state, p_f32, max_action, action_dim)
    out = jax.block_until_ready(out)
    ref = actor_reference(state, params, max_action)
    assert out.shape == (batch, action_dim)
    assert jnp.allclose(out, ref, atol=1e-4, rtol=1e-4), "f32 mismatch vs reference"

    # --- multi-tile grid check (partial last tile, small block_b) ---
    big_batch = 392
    state_big = jax.random.normal(k_state2, (big_batch, state_dim), jnp.float32)
    out_big = actor_forward(state_big, p_f32, max_action, action_dim, block_b=128)
    out_big = jax.block_until_ready(out_big)
    ref_big = actor_reference(state_big, params, max_action)
    assert out_big.shape == (big_batch, action_dim)
    assert jnp.allclose(out_big, ref_big, atol=1e-4, rtol=1e-4), "grid mismatch vs reference"

    # --- default bf16-weight path (also exercises the >=2-step v7x tiling) ---
    out_bf16 = actor_forward(state_big, p_bf16, max_action, action_dim)
    out_bf16 = jax.block_until_ready(out_bf16)
    assert out_bf16.shape == (big_batch, action_dim)
    assert jnp.allclose(out_bf16, ref_big, atol=5e-2, rtol=5e-2), "bf16 mismatch vs reference"

    print("KERNEL_OK")
</pallas_src>

<mosaic_0001>
module attributes {stable_mosaic.version = 11 : i64} {
  func.func @_actor_kernel(%arg0: i32, %arg1: memref<1x1xf32, #tpu.memory_space<smem>>, %arg2: memref<8x32xf32, #tpu.memory_space<vmem>>, %arg3: memref<32x512xf32, #tpu.memory_space<vmem>>, %arg4: memref<1x512xf32, #tpu.memory_space<vmem>>, %arg5: memref<512x384xf32, #tpu.memory_space<vmem>>, %arg6: memref<1x384xf32, #tpu.memory_space<vmem>>, %arg7: memref<384x128xf32, #tpu.memory_space<vmem>>, %arg8: memref<1x128xf32, #tpu.memory_space<vmem>>, %arg9: memref<8x8xf32, #tpu.memory_space<vmem>>) attributes {dimension_semantics = [#tpu.dimension_semantics<parallel>], iteration_bounds = array<i64: 1>, scalar_prefetch = 0 : i64, scratch_operands = 0 : i64, tpu.core_type = #tpu.core_type<tc>, window_params = [{transform_indices = @transform_0, window_bounds = array<i64: 1, 1>}, {transform_indices = @transform_1, window_bounds = array<i64: 8, 32>}, {pipeline_mode = #tpu.pipeline_mode<synchronous>, transform_indices = @transform_2, window_bounds = array<i64: 32, 512>}, {pipeline_mode = #tpu.pipeline_mode<synchronous>, transform_indices = @transform_3, window_bounds = array<i64: 1, 512>}, {pipeline_mode = #tpu.pipeline_mode<synchronous>, transform_indices = @transform_4, window_bounds = array<i64: 512, 384>}, {pipeline_mode = #tpu.pipeline_mode<synchronous>, transform_indices = @transform_5, window_bounds = array<i64: 1, 384>}, {pipeline_mode = #tpu.pipeline_mode<synchronous>, transform_indices = @transform_6, window_bounds = array<i64: 384, 128>}, {pipeline_mode = #tpu.pipeline_mode<synchronous>, transform_indices = @transform_7, window_bounds = array<i64: 1, 128>}, {transform_indices = @transform_8, window_bounds = array<i64: 8, 8>}]} {
    %c0 = arith.constant 0 : index
    %c0_0 = arith.constant 0 : index
    %0 = vector.load %arg2[%c0, %c0_0] : memref<8x32xf32, #tpu.memory_space<vmem>>, vector<8x32xf32>
    %c0_1 = arith.constant 0 : index
    %c0_2 = arith.constant 0 : index
    %1 = vector.load %arg3[%c0_1, %c0_2] : memref<32x512xf32, #tpu.memory_space<vmem>>, vector<32x512xf32>
    %cst = arith.constant dense<0.000000e+00> : vector<8x512xf32>
    %2 = tpu.matmul %0, %1, %cst {dimension_numbers = #tpu.dot_dimension_numbers<[1], [0], [0], [1], [0, 0, 1, 1], [], []>} : vector<8x32xf32>, vector<32x512xf32>, vector<8x512xf32> -> vector<8x512xf32>
    %c0_3 = arith.constant 0 : index
    %c0_4 = arith.constant 0 : index
    %3 = vector.load %arg4[%c0_3, %c0_4] : memref<1x512xf32, #tpu.memory_space<vmem>>, vector<1x512xf32>
    %4 = vector.broadcast %3 : vector<1x512xf32> to vector<8x512xf32>
    %5 = arith.addf %2, %4 : vector<8x512xf32>
    %cst_5 = arith.constant 0.000000e+00 : f32
    %6 = vector.broadcast %cst_5 : f32 to vector<8x512xf32>
    %7 = arith.maximumf %5, %6 : vector<8x512xf32>
    %c0_6 = arith.constant 0 : index
    %c0_7 = arith.constant 0 : index
    %8 = vector.load %arg5[%c0_6, %c0_7] : memref<512x384xf32, #tpu.memory_space<vmem>>, vector<512x384xf32>
    %cst_8 = arith.constant dense<0.000000e+00> : vector<8x384xf32>
    %9 = tpu.matmul %7, %8, %cst_8 {dimension_numbers = #tpu.dot_dimension_numbers<[1], [0], [0], [1], [0, 0, 1, 1], [], []>} : vector<8x512xf32>, vector<512x384xf32>, vector<8x384xf32> -> vector<8x384xf32>
    %c0_9 = arith.constant 0 : index
    %c0_10 = arith.constant 0 : index
    %10 = vector.load %arg6[%c0_9, %c0_10] : memref<1x384xf32, #tpu.memory_space<vmem>>, vector<1x384xf32>
    %11 = vector.broadcast %10 : vector<1x384xf32> to vector<8x384xf32>
    %12 = arith.addf %9, %11 : vector<8x384xf32>
    %cst_11 = arith.constant 0.000000e+00 : f32
    %13 = vector.broadcast %cst_11 : f32 to vector<8x384xf32>
    %14 = arith.maximumf %12, %13 : vector<8x384xf32>
    %c0_12 = arith.constant 0 : index
    %c0_13 = arith.constant 0 : index
    %15 = vector.load %arg7[%c0_12, %c0_13] : memref<384x128xf32, #tpu.memory_space<vmem>>, vector<384x128xf32>
    %cst_14 = arith.constant dense<0.000000e+00> : vector<8x128xf32>
    %16 = tpu.matmul %14, %15, %cst_14 {dimension_numbers = #tpu.dot_dimension_numbers<[1], [0], [0], [1], [0, 0, 1, 1], [], []>} : vector<8x384xf32>, vector<384x128xf32>, vector<8x128xf32> -> vector<8x128xf32>
    %c0_15 = arith.constant 0 : index
    %c0_16 = arith.constant 0 : index
    %17 = vector.load %arg8[%c0_15, %c0_16] : memref<1x128xf32, #tpu.memory_space<vmem>>, vector<1x128xf32>
    %18 = vector.broadcast %17 : vector<1x128xf32> to vector<8x128xf32>
    %19 = arith.addf %16, %18 : vector<8x128xf32>
    %20 = vector.extract_strided_slice %19 {offsets = [0, 0], sizes = [8, 8], strides = [1, 1]} : vector<8x128xf32> to vector<8x8xf32>
    %21 = math.tanh %20 : vector<8x8xf32>
    %c0_17 = arith.constant 0 : index
    %c0_18 = arith.constant 0 : index
    %22 = memref.load %arg1[%c0_17, %c0_18] : memref<1x1xf32, #tpu.memory_space<smem>>
    %23 = vector.broadcast %22 : f32 to vector<8x8xf32>
    %24 = arith.mulf %21, %23 : vector<8x8xf32>
    %c0_19 = arith.constant 0 : index
    %c0_20 = arith.constant 0 : index
    %25 = vector.load %arg9[%c0_19, %c0_20] : memref<8x8xf32, #tpu.memory_space<vmem>>, vector<8x8xf32>
    tpu.vector_store %arg9[%c0_19, %c0_20], %24 {strides = array<i32>} : memref<8x8xf32, #tpu.memory_space<vmem>>, vector<8x8xf32>,
    return
  }
  func.func @transform_0(%arg0: i32) -> (i32, i32) {
    %c0_i32 = arith.constant 0 : i32
    %c0_i32_0 = arith.constant 0 : i32
    %c0_i32_1 = arith.constant 0 : i32
    return %c0_i32, %c0_i32_0 : i32, i32
  }
  func.func @transform_1(%arg0: i32) -> (i32, i32) {
    %c0_i32 = arith.constant 0 : i32
    %c0_i32_0 = arith.constant 0 : i32
    return %arg0, %c0_i32 : i32, i32
  }
  func.func @transform_2(%arg0: i32) -> (i32, i32) {
    %c0_i32 = arith.constant 0 : i32
    %c0_i32_0 = arith.constant 0 : i32
    %c0_i32_1 = arith.constant 0 : i32
    return %c0_i32, %c0_i32_0 : i32, i32
  }
  func.func @transform_3(%arg0: i32) -> (i32, i32) {
    %c0_i32 = arith.constant 0 : i32
    %c0_i32_0 = arith.constant 0 : i32
    %c0_i32_1 = arith.constant 0 : i32
    return %c0_i32, %c0_i32_0 : i32, i32
  }
  func.func @transform_4(%arg0: i32) -> (i32, i32) {
    %c0_i32 = arith.constant 0 : i32
    %c0_i32_0 = arith.constant 0 : i32
    %c0_i32_1 = arith.constant 0 : i32
    return %c0_i32, %c0_i32_0 : i32, i32
  }
  func.func @transform_5(%arg0: i32) -> (i32, i32) {
    %c0_i32 = arith.constant 0 : i32
    %c0_i32_0 = arith.constant 0 : i32
    %c0_i32_1 = arith.constant 0 : i32
    return %c0_i32, %c0_i32_0 : i32, i32
  }
  func.func @transform_6(%arg0: i32) -> (i32, i32) {
    %c0_i32 = arith.constant 0 : i32
    %c0_i32_0 = arith.constant 0 : i32
    %c0_i32_1 = arith.constant 0 : i32
    return %c0_i32, %c0_i32_0 : i32, i32
  }
  func.func @transform_7(%arg0: i32) -> (i32, i32) {
    %c0_i32 = arith.constant 0 : i32
    %c0_i32_0 = arith.constant 0 : i32
    %c0_i32_1 = arith.constant 0 : i32
    return %c0_i32, %c0_i32_0 : i32, i32
  }
  func.func @transform_8(%arg0: i32) -> (i32, i32) {
    %c0_i32 = arith.constant 0 : i32
    %c0_i32_0 = arith.constant 0 : i32
    return %arg0, %c0_i32 : i32, i32
  }
}

</mosaic_0001>

<bundles_post_ra>
// kernel: tpu_custom_call.1
= control target key start
LH: loop header
LB: loop body
LE: loop exit
PB: predicated region body
PF: predicated region fallthrough
CT: control target
= control target key end

     0   :  { %14 = vsyncpa [#allocation4], 0  ;;  %s1713_s0 = inlined_call_operand.<no memory space> [shape: f32[1,1], index: 0, kind: input, shape index: {}]   ;;  %s1714_s1 = inlined_call_operand.hbm [shape: f32[8,32], index: 1, kind: input, shape index: {}]   ;;  %s1715_s2 = inlined_call_operand.hbm [shape: f32[32,512], index: 2, kind: input, shape index: {}]   ;;  %s1716_s3 = inlined_call_operand.vmem [shape: f32[1,512], index: 3, kind: input, shape index: {}]   ;;  %s1717_s4 = inlined_call_operand.hbm [shape: f32[512,384], index: 4, kind: input, shape index: {}]   ;;  %s1718_s5 = inlined_call_operand.vmem [shape: f32[1,384], index: 5, kind: input, shape index: {}]   ;;  %s1719_s6 = inlined_call_operand.hbm [shape: f32[384,128], index: 6, kind: input, shape index: {}]   ;;  %s1720_s7 = inlined_call_operand.vmem [shape: f32[1,128], index: 7, kind: input, shape index: {}]   ;;  %s1721_s8 = inlined_call_operand.hbm [shape: f32[8,8], index: 8, kind: output, shape index: {}]  }
   0x1   :  { %15 = vsyncpa [#allocation7], 0 }
   0x2   :  { %16 = vsyncpa [#allocation10], 0 }
   0x3   :  { %17 = vsyncpa [#allocation5], 0  ;;  %s1547_s27 = smov [#allocation6]   ;;  %s1429_s9 = scalar_lea.hbm %s1715_s2, 2048 }
   0x4   :  { %s35_s28 = sshll.u32 %s1547_s27, 4  ;;  %p1430_p0 = scmp.ne.s32.totalorder %s1715_s2, %s1429_s9  ;;  %s36_s28 = int_to_ptr.vmem [resolvable:$true] %s35_s28 }
   0x5   :  { %p1433_p1 = scmp.lt.u32.totalorder %s1429_s9, %s1715_s2 }
   0x7   :  { %p1435_p2 = pnand %p1433_p1, %p1430_p0 }
   0x9   :  { %1438 = shalt.err (!%p1435_p2)
}
   0xa   :  { %s1439_s14 = scalar_lea.vmem %s36_s28, 2048  ;;  %p1444_p4 = scmp.lt.s32.totalorder %s36_s28, %s36_s28 }
   0xb   :  { %p1440_p3 = scmp.ne.s32.totalorder %s36_s28, %s1439_s14  ;;  %p1445_p5 = scmp.lt.s32.totalorder %s1439_s14, %s1439_s14 }
   0xd   :  { %p1446_p6 = por %p1445_p5, %p1444_p4 }
   0xf   :  { %p1447_p7 = pnand %p1446_p6, %p1440_p3 }
  0x11   :  { %1450 = shalt.err (!%p1447_p7)
}
  0x12   :  { %s1548_s15 = smov 512   ;;  %s1549_s16 = smov 32  }
  0x13   :  { %41 = dma.hbm_to_vmem [thread:$0]  %s1715_s2, 2048, %s36_s28, [#allocation7], %s1548_s15, %s1548_s15, %s1549_s16  }
  0x14   :  { %s1550_s19 = smov [#allocation3]   ;;  %s1551_s21 = smov [#allocation8]  }
  0x15   :  { %s26_s20 = sshll.u32 %s1550_s19, 4  ;;  %s49_s22 = sshll.u32 %s1551_s21, 4  ;;  %s27_s20 = int_to_ptr.vmem [resolvable:$true] %s26_s20  ;;  %s50_s22 = int_to_ptr.vmem [resolvable:$true] %s49_s22 }
  0x16   :  { %s1451_s25 = scalar_lea.hbm %s1714_s1, 128 }
  0x17   :  { %p1452_p8 = scmp.ne.s32.totalorder %s1714_s1, %s1451_s25  ;;  %p1455_p9 = scmp.lt.u32.totalorder %s1451_s25, %s1714_s1 }
  0x19   :  { %p1457_p10 = pnand %p1455_p9, %p1452_p8 }
  0x1b   :  { %1460 = shalt.err (!%p1457_p10)
}
  0x1c   :  { %s1461_s2 = scalar_lea.vmem %s27_s20, 128  ;;  %p1466_p12 = scmp.lt.s32.totalorder %s27_s20, %s27_s20 }
  0x1d   :  { %p1462_p11 = scmp.ne.s32.totalorder %s27_s20, %s1461_s2  ;;  %p1467_p13 = scmp.lt.s32.totalorder %s1461_s2, %s1461_s2 }
  0x1f   :  { %p1468_p0 = por %p1467_p13, %p1466_p12 }
  0x21   :  { %p1469_p1 = pnand %p1468_p0, %p1462_p11 }
  0x23   :  { %1472 = shalt.err (!%p1469_p1)
}
  0x24   :  { %29 = dma.hbm_to_vmem [thread:$0]  %s1714_s1, 128, %s27_s20, [#allocation4]  }
  0x25   :  { %s1473_s12 = scalar_lea.hbm %s1717_s4, 24576 }
  0x26   :  { %p1474_p2 = scmp.ne.s32.totalorder %s1717_s4, %s1473_s12  ;;  %p1477_p3 = scmp.lt.u32.totalorder %s1473_s12, %s1717_s4 }
  0x28   :  { %p1479_p4 = pnand %p1477_p3, %p1474_p2 }
  0x2a   :  { %1482 = shalt.err (!%p1479_p4)
}
  0x2b   :  { %s1483_s17 = scalar_lea.vmem %s50_s22, 24576  ;;  %p1488_p6 = scmp.lt.s32.totalorder %s50_s22, %s50_s22 }
  0x2c   :  { %p1484_p5 = scmp.ne.s32.totalorder %s50_s22, %s1483_s17  ;;  %p1489_p7 = scmp.lt.s32.totalorder %s1483_s17, %s1483_s17 }
  0x2e   :  { %p1490_p8 = por %p1489_p7, %p1488_p6 }
  0x30   :  { %p1491_p9 = pnand %p1490_p8, %p1484_p5 }
  0x32   :  { %1494 = shalt.err (!%p1491_p9)
}
  0x33   :  { %s1552_s1 = smov 384   ;;  %s1553_s18 = smov 24  }
  0x34   :  { %55 = dma.hbm_to_vmem [thread:$0]  %s1717_s4, 24576, %s50_s22, [#allocation7], %s1552_s1, %s1552_s1, %s1553_s18  }
  0x35   :  { %s1554_s21 = smov [#allocation9]   ;;  %s1495_s26 = scalar_lea.hbm %s1719_s6, 6144 }
  0x36   :  { %s63_s23 = sshll.u32 %s1554_s21, 4  ;;  %p1496_p10 = scmp.ne.s32.totalorder %s1719_s6, %s1495_s26  ;;  %s64_s23 = int_to_ptr.vmem [resolvable:$true] %s63_s23 }
  0x37   :  { %p1499_p11 = scmp.lt.u32.totalorder %s1495_s26, %s1719_s6 }
  0x39   :  { %p1501_p12 = pnand %p1499_p11, %p1496_p10 }
  0x3b   :  { %1504 = shalt.err (!%p1501_p12)
}
  0x3c   :  { %s1505_s28 = scalar_lea.vmem %s64_s23, 6144  ;;  %p1510_p0 = scmp.lt.s32.totalorder %s64_s23, %s64_s23 }
  0x3d   :  { %p1506_p13 = scmp.ne.s32.totalorder %s64_s23, %s1505_s28  ;;  %p1511_p1 = scmp.lt.s32.totalorder %s1505_s28, %s1505_s28 }
  0x3f   :  { %p1512_p2 = por %p1511_p1, %p1510_p0 }
  0x41   :  { %p1513_p3 = pnand %p1512_p2, %p1506_p13 }
  0x43   :  { %1516 = shalt.err (!%p1513_p3)
}
  0x44   :  { %s1555_s4 = smov 128   ;;  %s1556_s22 = smov 8  }
  0x45   :  { %69 = dma.hbm_to_vmem [thread:$0]  %s1719_s6, 6144, %s64_s23, [#allocation10], %s1555_s4, %s1555_s4, %s1556_s22  }
  0x46   :  { %1539 = dma.done.wait [#allocation4], 128  }
  0x47   :  { %1540 = vsyncadd [#allocation4], 4294967168 }
  0x48   :  { %1541 = dma.done.wait [#allocation7], 26624  }
  0x49   :  { %1542 = vsyncadd [#allocation7], 4294940672 }
  0x4a   :  { %1543 = dma.done.wait [#allocation10], 6144  }
  0x4b   :  { %1544 = vsyncadd [#allocation10], 4294961152  ;;  %v1557_v0 = vmov 0.0   ;;  %v86_v1 = vld [vmem:[#allocation6 + $0x8] sm:$0xff]  ;;  %v85_v3 = vld [vmem:[#allocation6] sm:$0xff]  ;;  %vm123_vm0 = vcmask 261120  }
  0x4c   :  { %191 = vmatprep.mubr.f32.mxu0 %v1557_v0  ;;  %262 = vmatprep.mubr.f32.mxu1 %v1557_v0  ;;  %v90_v2 = vld [vmem:[#allocation6 + $0x28] sm:$0xff]  ;;  %v89_v5 = vld [vmem:[#allocation6 + $0x20] sm:$0xff]  ;;  %v88_v12 = vld [vmem:[#allocation6 + $0x18] sm:$0xff]  ;;  %vm1559_vm1 = vmmov 0   ;;  %s1560_s16 = smov [#allocation11]   ;;  %vm966_vm2 = vcmask 64512  }
  0x4d   :  { %v1145_v4 = vpack.c.bf16 %v90_v2, %v86_v1  ;;  %v94_v6 = vld [vmem:[#allocation6 + $0x48] sm:$0xff]  ;;  %v1147_v8 = vpack.c.bf16 %v89_v5, %v85_v3  ;;  %v93_v10 = vld [vmem:[#allocation6 + $0x40] sm:$0xff]  ;;  %v92_v13 = vld [vmem:[#allocation6 + $0x38] sm:$0xff]  ;;  %s974_s17 = sshll.u32 %s1560_s16, 4  ;;  %s975_s17 = int_to_ptr.vmem [resolvable:$true] %s974_s17 }
  0x4e   :  { %v98_v7 = vld [vmem:[#allocation6 + $0x68] sm:$0xff]  ;;  %v97_v11 = vld [vmem:[#allocation6 + $0x60] sm:$0xff]  ;;  %v87_v14 = vld [vmem:[#allocation6 + $0x10] sm:$0xff]  ;;  %v1153_v16 = vpack.c.bf16 %v92_v13, %v88_v12  ;;  %s1517_s1 = scalar_lea.vmem %s975_s17, 128  ;;  %p1522_p5 = scmp.lt.s32.totalorder %s975_s17, %s975_s17 }
  0x4f   :  { %v1149_v9 = vpack.c.bf16 %v98_v7, %v94_v6  ;;  %1146 = vmatprep.subr.bf16.mxu0 %v1145_v4  ;;  %v1151_v15 = vpack.c.bf16 %v97_v11, %v93_v10  ;;  %v91_v17 = vld [vmem:[#allocation6 + $0x30] sm:$0xff]  ;;  %v96_v18 = vld [vmem:[#allocation6 + $0x58] sm:$0xff]  ;;  %v274_v24 = vld [vmem:[#allocation8 + $0x8] sm:$0xff]  ;;  %p1518_p4 = scmp.ne.s32.totalorder %s975_s17, %s1517_s1  ;;  %p1523_p6 = scmp.lt.s32.totalorder %s1517_s1, %s1517_s1 }
  0x50   :  { %1148 = vmatpush1.bf16.msra.mxu0 %v1147_v8  ;;  %v100_v19 = vld [vmem:[#allocation6 + $0x78] sm:$0xff]  ;;  %v1155_v20 = vpack.c.bf16 %v91_v17, %v87_v14  ;;  %v95_v22 = vld [vmem:[#allocation6 + $0x50] sm:$0xff]  ;;  %1154 = vmatprep.subr.bf16.mxu1 %v1153_v16  ;;  %v277_v25 = vld [vmem:[#allocation8 + $0x20] sm:$0xff] }
  0x51   :  { %1150 = vmatprep.subr.bf16.mxu0 %v1149_v9  ;;  %v1157_v21 = vpack.c.bf16 %v100_v19, %v96_v18  ;;  %v99_v23 = vld [vmem:[#allocation6 + $0x70] sm:$0xff]  ;;  %v273_v26 = vld [vmem:[#allocation8] sm:$0xff]  ;;  %v276_v27 = vld [vmem:[#allocation8 + $0x18] sm:$0xff]  ;;  %v1161_v29 = vpack.c.bf16 %v277_v25, %v274_v24  ;;  %p1524_p7 = por %p1523_p6, %p1522_p5 }
  0x52   :  { %1156 = vmatpush1.bf16.msra.mxu1 %v1155_v20  ;;  %v1159_v28 = vpack.c.bf16 %v99_v23, %v95_v22  ;;  %v280_v30 = vld [vmem:[#allocation8 + $0x38] sm:$0xff]  ;;  %v283_v31 = vld [vmem:[#allocation8 + $0x50] sm:$0xff]  ;;  %v1163_v33 = vpack.c.bf16 %v276_v27, %v273_v26  ;;  %v282_v36 = vld [vmem:[#allocation8 + $0x48] sm:$0xff] }
  0x53   :  { %v84_v32 = vld [vmem:[#allocation3] sm:$0xff]  ;;  %1158 = vmatprep.subr.bf16.mxu1 %v1157_v21  ;;  %v1165_v34 = vpack.c.bf16 %v283_v31, %v280_v30  ;;  %v279_v35 = vld [vmem:[#allocation8 + $0x30] sm:$0xff]  ;;  %v286_v37 = vld [vmem:[#allocation8 + $0x68] sm:$0xff]  ;;  %p1525_p8 = pnand %p1524_p7, %p1518_p4 }
  0x54   :  { %1152 = vmatpush1.bf16.msra.mxu0 %v1151_v15  ;;  %v289_v38 = vld [vmem:[#allocation8 + $0x80] sm:$0xff]  ;;  %v1167_v39 = vpack.c.bf16 %v282_v36, %v279_v35  ;;  %v288_v42 = vld [vmem:[#allocation8 + $0x78] sm:$0xff]  ;;  %v295_v44 = vld [vmem:[#allocation8 + $0xb0] sm:$0xff] }
  0x55   :  { %1162 = vmatprep.subr.bf16.mxu0 %v1161_v29  ;;  %v1169_v40 = vpack.c.bf16 %v289_v38, %v286_v37  ;;  %v285_v41 = vld [vmem:[#allocation8 + $0x60] sm:$0xff]  ;;  %v292_v43 = vld [vmem:[#allocation8 + $0x98] sm:$0xff]  ;;  %v291_v46 = vld [vmem:[#allocation8 + $0x90] sm:$0xff] }
  0x56   :  { %1160 = vmatpush1.bf16.msra.mxu1 %v1159_v28  ;;  %v1171_v45 = vpack.c.bf16 %v288_v42, %v285_v41  ;;  %v294_v47 = vld [vmem:[#allocation8 + $0xa8] sm:$0xff]  ;;  %v1173_v48 = vpack.c.bf16 %v295_v44, %v292_v43  ;;  %v323_v50 = vld [vmem:[#allocation8 + $0x190] sm:$0xff]  ;;  %v301_v52 = vld [vmem:[#allocation8 + $0xe0] sm:$0xff] }
  0x57   :  { %985 = vmatmul.mubr.msk.f32.vlgmr.msra.gmra.mrb[0].mxu0 %vm123_vm0, %v84_v32  ;;  %v298_v49 = vld [vmem:[#allocation8 + $0xc8] sm:$0xff]  ;;  %v275_v54 = vld [vmem:[#allocation8 + $0x10] sm:$0xff]  ;;  %v329_v57 = vld [vmem:[#allocation8 + $0x1c0] sm:$0xff]  ;;  %v1175_v58 = vpack.c.bf16 %v294_v47, %v291_v46 }
  0x58   :  { %1164 = vmatpush1.bf16.msra.mxu0 %v1163_v33  ;;  %v326_v51 = vld [vmem:[#allocation8 + $0x1a8] sm:$0xff]  ;;  %v297_v59 = vld [vmem:[#allocation8 + $0xc0] sm:$0xff]  ;;  %v300_v60 = vld [vmem:[#allocation8 + $0xd8] sm:$0xff]  ;;  %v1177_v62 = vpack.c.bf16 %v301_v52, %v298_v49 }
  0x59   :  { %1166 = vmatprep.subr.bf16.mxu0 %v1165_v34  ;;  %986 = vmatmul.mubr.msk.f32.vlgmr.msra.gmra.mrb[0].mxu1 %vm123_vm0, %v84_v32  ;;  %v1289_v53 = vpack.c.bf16 %v326_v51, %v323_v50  ;;  %v278_v55 = vld [vmem:[#allocation8 + $0x28] sm:$0xff]  ;;  %v332_v61 = vld [vmem:[#allocation8 + $0x1d8] sm:$0xff]  ;;  %v281_v2 = vld [vmem:[#allocation8 + $0x40] sm:$0xff]  ;;  %v1179_v10 = vpack.c.bf16 %v300_v60, %v297_v59 }
  0x5a   :  { %v1291_v56 = vpack.c.bf16 %v278_v55, %v275_v54  ;;  %v304_v63 = vld [vmem:[#allocation8 + $0xf8] sm:$0xff]  ;;  %v1293_v1 = vpack.c.bf16 %v332_v61, %v329_v57  ;;  %v307_v4 = vld [vmem:[#allocation8 + $0x110] sm:$0xff]  ;;  %v338_v7 = vld [vmem:[#allocation8 + $0x208] sm:$0xff] }
  0x5b   :  { %1290 = vmatprep.subr.bf16.mxu1 %v1289_v53  ;;  %v284_v3 = vld [vmem:[#allocation8 + $0x58] sm:$0xff]  ;;  %v335_v6 = vld [vmem:[#allocation8 + $0x1f0] sm:$0xff]  ;;  %v306_v12 = vld [vmem:[#allocation8 + $0x108] sm:$0xff]  ;;  %v1181_v14 = vpack.c.bf16 %v307_v4, %v304_v63 }
  0x5c   :  { %1168 = vmatpush1.bf16.msra.mxu0 %v1167_v39  ;;  %1292 = vmatpush3.bf16.msra.mxu1 %v1291_v56  ;;  %v1295_v5 = vpack.c.bf16 %v284_v3, %v281_v2  ;;  %v1297_v8 = vpack.c.bf16 %v338_v7, %v335_v6  ;;  %v287_v9 = vld [vmem:[#allocation8 + $0x70] sm:$0xff]  ;;  %v290_v13 = vld [vmem:[#allocation8 + $0x88] sm:$0xff]  ;;  %v341_v17 = vld [vmem:[#allocation8 + $0x220] sm:$0xff] }
  0x5d   :  { %1170 = vmatprep.subr.bf16.mxu0 %v1169_v40  ;;  %1294 = vmatprep.subr.bf16.mxu1 %v1293_v1  ;;  %v303_v11 = vld [vmem:[#allocation8 + $0xf0] sm:$0xff]  ;;  %v310_v15 = vld [vmem:[#allocation8 + $0x128] sm:$0xff]  ;;  %v1299_v16 = vpack.c.bf16 %v290_v13, %v287_v9  ;;  %v344_v18 = vld [vmem:[#allocation8 + $0x238] sm:$0xff] }
  0x5e   :  { %v313_v19 = vld [vmem:[#allocation8 + $0x140] sm:$0xff]  ;;  %v1301_v20 = vpack.c.bf16 %v344_v18, %v341_v17  ;;  %v296_v22 = vld [vmem:[#allocation8 + $0xb8] sm:$0xff]  ;;  %v347_v23 = vld [vmem:[#allocation8 + $0x250] sm:$0xff]  ;;  %v1183_v24 = vpack.c.bf16 %v306_v12, %v303_v11 }
  0x5f   :  { %v293_v21 = vld [vmem:[#allocation8 + $0xa0] sm:$0xff]  ;;  %v350_v25 = vld [vmem:[#allocation8 + $0x268] sm:$0xff]  ;;  %v1185_v26 = vpack.c.bf16 %v313_v19, %v310_v15  ;;  %v312_v28 = vld [vmem:[#allocation8 + $0x138] sm:$0xff] }
  0x60   :  { %1172 = vmatpush1.bf16.msra.mxu0 %v1171_v45  ;;  %1296 = vmatpush3.bf16.msra.mxu1 %v1295_v5  ;;  %v309_v27 = vld [vmem:[#allocation8 + $0x120] sm:$0xff]  ;;  %v316_v29 = vld [vmem:[#allocation8 + $0x158] sm:$0xff]  ;;  %v1303_v30 = vpack.c.bf16 %v296_v22, %v293_v21  ;;  %v319_v31 = vld [vmem:[#allocation8 + $0x170] sm:$0xff]  ;;  %v1305_v32 = vpack.c.bf16 %v350_v25, %v347_v23 }
  0x61   :  { %1174 = vmatprep.subr.bf16.mxu0 %v1173_v48  ;;  %1298 = vmatprep.subr.bf16.mxu1 %v1297_v8  ;;  %v299_v33 = vld [vmem:[#allocation8 + $0xd0] sm:$0xff]  ;;  %v302_v34 = vld [vmem:[#allocation8 + $0xe8] sm:$0xff]  ;;  %v353_v35 = vld [vmem:[#allocation8 + $0x280] sm:$0xff]  ;;  %v1187_v37 = vpack.c.bf16 %v312_v28, %v309_v27  ;;  %v1189_v38 = vpack.c.bf16 %v319_v31, %v316_v29 }
  0x62   :  { %v356_v36 = vld [vmem:[#allocation8 + $0x298] sm:$0xff]  ;;  %v315_v39 = vld [vmem:[#allocation8 + $0x150] sm:$0xff]  ;;  %v318_v40 = vld [vmem:[#allocation8 + $0x168] sm:$0xff]  ;;  %v1307_v42 = vpack.c.bf16 %v302_v34, %v299_v33 }
  0x63   :  { %v322_v41 = vld [vmem:[#allocation8 + $0x188] sm:$0xff]  ;;  %v325_v43 = vld [vmem:[#allocation8 + $0x1a0] sm:$0xff]  ;;  %v1309_v44 = vpack.c.bf16 %v356_v36, %v353_v35  ;;  %v308_v46 = vld [vmem:[#allocation8 + $0x118] sm:$0xff]  ;;  %v1191_v49 = vpack.c.bf16 %v318_v40, %v315_v39 }
  0x64   :  { %1176 = vmatpush1.bf16.msra.mxu0 %v1175_v58  ;;  %1300 = vmatpush3.bf16.msra.mxu1 %v1299_v16  ;;  %v305_v45 = vld [vmem:[#allocation8 + $0x100] sm:$0xff]  ;;  %v359_v47 = vld [vmem:[#allocation8 + $0x2b0] sm:$0xff]  ;;  %v362_v48 = vld [vmem:[#allocation8 + $0x2c8] sm:$0xff]  ;;  %v1193_v50 = vpack.c.bf16 %v325_v43, %v322_v41 }
  0x65   :  { %1178 = vmatprep.subr.bf16.mxu0 %v1177_v62  ;;  %1302 = vmatprep.subr.bf16.mxu1 %v1301_v20  ;;  %v321_v51 = vld [vmem:[#allocation8 + $0x180] sm:$0xff]  ;;  %v324_v52 = vld [vmem:[#allocation8 + $0x198] sm:$0xff]  ;;  %v1311_v54 = vpack.c.bf16 %v308_v46, %v305_v45  ;;  %v331_v55 = vld [vmem:[#allocation8 + $0x1d0] sm:$0xff]  ;;  %v1313_v56 = vpack.c.bf16 %v362_v48, %v359_v47 }
  0x66   :  { %v328_v53 = vld [vmem:[#allocation8 + $0x1b8] sm:$0xff]  ;;  %v311_v57 = vld [vmem:[#allocation8 + $0x130] sm:$0xff]  ;;  %v314_v58 = vld [vmem:[#allocation8 + $0x148] sm:$0xff]  ;;  %v1195_v59 = vpack.c.bf16 %v324_v52, %v321_v51 }
  0x67   :  { %v1197_v60 = vpack.c.bf16 %v331_v55, %v328_v53  ;;  %v327_v61 = vld [vmem:[#allocation8 + $0x1b0] sm:$0xff]  ;;  %v330_v62 = vld [vmem:[#allocation8 + $0x1c8] sm:$0xff]  ;;  %v1315_v63 = vpack.c.bf16 %v314_v58, %v311_v57  ;;  %v337_v2 = vld [vmem:[#allocation8 + $0x200] sm:$0xff] }
  0x68   :  { %1180 = vmatpush1.bf16.msra.mxu0 %v1179_v10  ;;  %1304 = vmatpush3.bf16.msra.mxu1 %v1303_v30  ;;  %v334_v1 = vld [vmem:[#allocation8 + $0x1e8] sm:$0xff]  ;;  %v1199_v3 = vpack.c.bf16 %v330_v62, %v327_v61  ;;  %v333_v5 = vld [vmem:[#allocation8 + $0x1e0] sm:$0xff]  ;;  %v336_v6 = vld [vmem:[#allocation8 + $0x1f8] sm:$0xff] }
  0x69   :  { %1182 = vmatprep.subr.bf16.mxu0 %v1181_v14  ;;  %1306 = vmatprep.subr.bf16.mxu1 %v1305_v32  ;;  %v1201_v4 = vpack.c.bf16 %v337_v2, %v334_v1  ;;  %v340_v7 = vld [vmem:[#allocation8 + $0x218] sm:$0xff]  ;;  %v343_v8 = vld [vmem:[#allocation8 + $0x230] sm:$0xff]  ;;  %v1203_v9 = vpack.c.bf16 %v336_v6, %v333_v5  ;;  %v342_v12 = vld [vmem:[#allocation8 + $0x228] sm:$0xff] }
  0x6a   :  { %v1205_v10 = vpack.c.bf16 %v343_v8, %v340_v7  ;;  %v339_v11 = vld [vmem:[#allocation8 + $0x210] sm:$0xff]  ;;  %v346_v13 = vld [vmem:[#allocation8 + $0x248] sm:$0xff]  ;;  %v349_v14 = vld [vmem:[#allocation8 + $0x260] sm:$0xff] }
  0x6b   :  { %v1207_v15 = vpack.c.bf16 %v342_v12, %v339_v11  ;;  %v1209_v16 = vpack.c.bf16 %v349_v14, %v346_v13  ;;  %v345_v17 = vld [vmem:[#allocation8 + $0x240] sm:$0xff]  ;;  %v348_v18 = vld [vmem:[#allocation8 + $0x258] sm:$0xff]  ;;  %v355_v20 = vld [vmem:[#allocation8 + $0x290] sm:$0xff] }
  0x6c   :  { %1184 = vmatpush1.bf16.msra.mxu0 %v1183_v24  ;;  %1308 = vmatpush3.bf16.msra.mxu1 %v1307_v42  ;;  %v352_v19 = vld [vmem:[#allocation8 + $0x278] sm:$0xff]  ;;  %v1211_v21 = vpack.c.bf16 %v348_v18, %v345_v17  ;;  %v351_v23 = vld [vmem:[#allocation8 + $0x270] sm:$0xff]  ;;  %v354_v24 = vld [vmem:[#allocation8 + $0x288] sm:$0xff] }
  0x6d   :  { %1186 = vmatprep.subr.bf16.mxu0 %v1185_v26  ;;  %1310 = vmatprep.subr.bf16.mxu1 %v1309_v44  ;;  %v1213_v22 = vpack.c.bf16 %v355_v20, %v352_v19  ;;  %v358_v25 = vld [vmem:[#allocation8 + $0x2a8] sm:$0xff]  ;;  %v361_v26 = vld [vmem:[#allocation8 + $0x2c0] sm:$0xff]  ;;  %v1215_v27 = vpack.c.bf16 %v354_v24, %v351_v23  ;;  %v360_v30 = vld [vmem:[#allocation8 + $0x2b8] sm:$0xff] }
  0x6e   :  { %v1217_v28 = vpack.c.bf16 %v361_v26, %v358_v25  ;;  %v357_v29 = vld [vmem:[#allocation8 + $0x2a0] sm:$0xff]  ;;  %v364_v32 = vld [vmem:[#allocation8 + $0x2d8] sm:$0xff]  ;;  %v367_v33 = vld [vmem:[#allocation8 + $0x2f0] sm:$0xff] }
  0x6f   :  { %v1219_v31 = vpack.c.bf16 %v360_v30, %v357_v29  ;;  %v365_v34 = vld [vmem:[#allocation8 + $0x2e0] sm:$0xff]  ;;  %v1221_v35 = vpack.c.bf16 %v367_v33, %v364_v32  ;;  %v368_v36 = vld [vmem:[#allocation8 + $0x2f8] sm:$0xff]  ;;  %v370_v44 = vld [vmem:[#allocation8 + $0x308] sm:$0xff] }
  0x70   :  { %1188 = vmatpush1.bf16.msra.mxu0 %v1187_v37  ;;  %1312 = vmatpush3.bf16.msra.mxu1 %v1311_v54  ;;  %v363_v37 = vld [vmem:[#allocation8 + $0x2d0] sm:$0xff]  ;;  %v1317_v39 = vpack.c.bf16 %v368_v36, %v365_v34  ;;  %v317_v41 = vld [vmem:[#allocation8 + $0x160] sm:$0xff]  ;;  %v320_v42 = vld [vmem:[#allocation8 + $0x178] sm:$0xff] }
  0x71   :  { %1190 = vmatprep.subr.bf16.mxu0 %v1189_v38  ;;  %1314 = vmatprep.subr.bf16.mxu1 %v1313_v56  ;;  %v366_v38 = vld [vmem:[#allocation8 + $0x2e8] sm:$0xff]  ;;  %v1319_v43 = vpack.c.bf16 %v320_v42, %v317_v41  ;;  %v373_v45 = vld [vmem:[#allocation8 + $0x320] sm:$0xff]  ;;  %v419_v46 = vld [vmem:[#allocation8 + $0x490] sm:$0xff] }
  0x72   :  { %v1223_v40 = vpack.c.bf16 %v366_v38, %v363_v37  ;;  %v1225_v47 = vpack.c.bf16 %v373_v45, %v370_v44  ;;  %v422_v48 = vld [vmem:[#allocation8 + $0x4a8] sm:$0xff]  ;;  %v1664_v53 = vld [vmem:[%s1716_s3] sm:$0xf]  ;;  %v379_v5 = vld [vmem:[#allocation8 + $0x350] sm:$0xff] }
  0x73   :  { %v374_v1 = vld [vmem:[#allocation8 + $0x328] sm:$0xff]  ;;  %v376_v2 = vld [vmem:[#allocation8 + $0x338] sm:$0xff]  ;;  %v425_v6 = vld [vmem:[#allocation8 + $0x4c0] sm:$0xff] }
  0x74   :  { %1192 = vmatpush1.bf16.msra.mxu0 %v1191_v49  ;;  %1316 = vmatpush3.bf16.msra.mxu1 %v1315_v63  ;;  %v1321_v49 = vpack.c.bf16 %v422_v48, %v419_v46  ;;  %v371_v63 = vld [vmem:[#allocation8 + $0x310] sm:$0xff]  ;;  %v428_v7 = vld [vmem:[#allocation8 + $0x4d8] sm:$0xff]  ;;  %v378_v13 = vld [vmem:[#allocation8 + $0x348] sm:$0xff] }
  0x75   :  { %1194 = vmatprep.subr.bf16.mxu0 %v1193_v50  ;;  %1318 = vmatprep.subr.bf16.mxu1 %v1317_v39  ;;  %v103_v50 = vlaneseq  ;;  %v1323_v11 = vpack.c.bf16 %v374_v1, %v371_v63  ;;  %v375_v12 = vld [vmem:[#allocation8 + $0x330] sm:$0xff]  ;;  %v1325_v17 = vpack.c.bf16 %v428_v7, %v425_v6  ;;  %v377_v18 = vld [vmem:[#allocation8 + $0x340] sm:$0xff]  ;;  %v380_v19 = vld [vmem:[#allocation8 + $0x358] sm:$0xff] }
  0x76   :  { %v382_v20 = vld [vmem:[#allocation8 + $0x368] sm:$0xff]  ;;  %v431_v23 = vld [vmem:[#allocation8 + $0x4f0] sm:$0xff]  ;;  %v1231_v26 = vpack.c.bf16 %v378_v13, %v375_v12  ;;  %v384_v29 = vld [vmem:[#allocation8 + $0x378] sm:$0xff] }
  0x77   :  { %v1658_v51 = vshrl.u32 %v103_v50, 7  ;;  %v434_v24 = vld [vmem:[#allocation8 + $0x508] sm:$0xff]  ;;  %v383_v32 = vld [vmem:[#allocation8 + $0x370] sm:$0xff]  ;;  %v388_v34 = vld [vmem:[#allocation8 + $0x398] sm:$0xff] }
  0x78   :  { %1196 = vmatpush1.bf16.msra.mxu0 %v1195_v59  ;;  %1320 = vmatpush3.bf16.msra.mxu1 %v1319_v43  ;;  %v369_v59 = vld [vmem:[#allocation8 + $0x300] sm:$0xff]  ;;  %v386_v33 = vld [vmem:[#allocation8 + $0x388] sm:$0xff]  ;;  %v440_v37 = vld [vmem:[#allocation8 + $0x538] sm:$0xff] }
  0x79   :  { %1198 = vmatprep.subr.bf16.mxu0 %v1197_v60  ;;  %1322 = vmatprep.subr.bf16.mxu1 %v1321_v49  ;;  %v105_v52 = vsub.s32 0, %v1658_v51  ;;  %v109_v54 = vsub.s32 1, %v1658_v51  ;;  %v117_v56 = vsub.s32 3, %v1658_v51  ;;  %v372_v60 = vld [vmem:[#allocation8 + $0x318] sm:$0xff]  ;;  %v437_v36 = vld [vmem:[#allocation8 + $0x520] sm:$0xff]  ;;  %v1331_v39 = vpack.c.bf16 %v386_v33, %v383_v32  ;;  %v390_v41 = vld [vmem:[#allocation8 + $0x3a8] sm:$0xff] }
  0x7a   :  { %v1333_v43 = vpack.c.bf16 %v440_v37, %v437_v36  ;;  %v389_v44 = vld [vmem:[#allocation8 + $0x3a0] sm:$0xff]  ;;  %v392_v45 = vld [vmem:[#allocation8 + $0x3b8] sm:$0xff]  ;;  %v394_v46 = vld [vmem:[#allocation8 + $0x3c8] sm:$0xff] }
  0x7b   :  { %v106_v55 = vrot.slane %v1664_v53, %v105_v52  ;;  %v110_v57 = vrot.slane %v1664_v53, %v109_v54  ;;  %v443_v48 = vld [vmem:[#allocation8 + $0x550] sm:$0xff]  ;;  %v446_v49 = vld [vmem:[#allocation8 + $0x568] sm:$0xff]  ;;  %v449_v1 = vld [vmem:[#allocation8 + $0x580] sm:$0xff] }
  0x7c   :  { %1200 = vmatpush1.bf16.msra.mxu0 %v1199_v3  ;;  %v118_v3 = vrot.slane %v1664_v53, %v117_v56  ;;  %v393_v56 = vld [vmem:[#allocation8 + $0x3c0] sm:$0xff]  ;;  %v403_v63 = vld [vmem:[#allocation8 + $0x410] sm:$0xff]  ;;  %v402_v6 = vld [vmem:[#allocation8 + $0x408] sm:$0xff] }
  0x7d   :  { %1202 = vmatprep.subr.bf16.mxu0 %v1201_v4  ;;  %v406_v12 = vld [vmem:[#allocation8 + $0x428] sm:$0xff]  ;;  %v409_v13 = vld [vmem:[#allocation8 + $0x440] sm:$0xff]  ;;  %v411_v32 = vld [vmem:[#allocation8 + $0x450] sm:$0xff] }
  0x7e   :  { %v413_v36 = vld [vmem:[#allocation8 + $0x460] sm:$0xff]  ;;  %v416_v37 = vld [vmem:[#allocation8 + $0x478] sm:$0xff] }
  0x80   :  { %1204 = vmatpush1.bf16.msra.mxu0 %v1203_v9 }
  0x81   :  { %1206 = vmatprep.subr.bf16.mxu0 %v1205_v10  ;;  %v1227_v10 = vpack.c.bf16 %v372_v60, %v369_v59  ;;  %v1337_v59 = vpack.c.bf16 %v446_v49, %v443_v48  ;;  %v395_v60 = vld [vmem:[#allocation8 + $0x3d0] sm:$0xff] }
  0x84   :  { %1208 = vmatpush1.bf16.msra.mxu0 %v1207_v15 }
  0x85   :  { %1210 = vmatprep.subr.bf16.mxu0 %v1209_v16  ;;  %v1229_v16 = vpack.c.bf16 %v379_v5, %v376_v2  ;;  %v452_v2 = vld [vmem:[#allocation8 + $0x598] sm:$0xff]  ;;  %v399_v5 = vld [vmem:[#allocation8 + $0x3f0] sm:$0xff] }
  0x88   :  { %1212 = vmatpush1.bf16.msra.mxu0 %v1211_v21 }
  0x89   :  { %1214 = vmatprep.subr.bf16.mxu0 %v1213_v22  ;;  %v385_v22 = vld [vmem:[#allocation8 + $0x380] sm:$0xff] }
  0x8a   :  { %v1233_v30 = vpack.c.bf16 %v385_v22, %v382_v20  ;;  %v408_v20 = vld [vmem:[#allocation8 + $0x438] sm:$0xff] }
  0x8c   :  { %1216 = vmatpush1.bf16.msra.mxu0 %v1215_v27  ;;  %v1327_v27 = vpack.c.bf16 %v380_v19, %v377_v18  ;;  %v405_v19 = vld [vmem:[#allocation8 + $0x420] sm:$0xff] }
  0x8d   :  { %1218 = vmatprep.subr.bf16.mxu0 %v1217_v28  ;;  %v381_v28 = vld [vmem:[#allocation8 + $0x360] sm:$0xff] }
  0x8e   :  { %v1235_v38 = vpack.c.bf16 %v384_v29, %v381_v28  ;;  %v464_v28 = vld [vmem:[#allocation8 + $0x5f8] sm:$0xff] }
  0x90   :  { %1220 = vmatpush1.bf16.msra.mxu0 %v1219_v31  ;;  %v1329_v31 = vpack.c.bf16 %v434_v24, %v431_v23  ;;  %v407_v23 = vld [vmem:[#allocation8 + $0x430] sm:$0xff]  ;;  %v410_v24 = vld [vmem:[#allocation8 + $0x448] sm:$0xff] }
  0x91   :  { %1222 = vmatprep.subr.bf16.mxu0 %v1221_v35  ;;  %v391_v35 = vld [vmem:[#allocation8 + $0x3b0] sm:$0xff] }
  0x92   :  { %v1237_v42 = vpack.c.bf16 %v391_v35, %v388_v34  ;;  %v414_v35 = vld [vmem:[#allocation8 + $0x468] sm:$0xff] }
  0x94   :  { %1224 = vmatpush1.bf16.msra.mxu0 %v1223_v40  ;;  %v387_v40 = vld [vmem:[#allocation8 + $0x390] sm:$0xff] }
  0x95   :  { %1226 = vmatprep.subr.bf16.mxu0 %v1225_v47  ;;  %v397_v47 = vld [vmem:[#allocation8 + $0x3e0] sm:$0xff]  ;;  %v1239_v50 = vpack.c.bf16 %v390_v41, %v387_v40  ;;  %v1351_v41 = vpack.c.bf16 %v416_v37, %v413_v36  ;;  %v785_v37 = vld [vmem:[#allocation9 + $0x90] sm:$0xff] }
 0x12a   :  { %v193_v58 = vpop.f32.mrb[0].mxu0 }
 0x12b   :  { %v194_v61 = vadd.f32 %v193_v58, %v106_v55  ;;  %v195_v62 = vpop.f32.mrb[1].mxu0  ;;  %v1335_v55 = vpack.c.bf16 %v392_v45, %v389_v44  ;;  %v1241_v58 = vpack.c.bf16 %v397_v47, %v394_v46  ;;  %v420_v44 = vld [vmem:[#allocation8 + $0x498] sm:$0xff]  ;;  %v427_v46 = vld [vmem:[#allocation8 + $0x4d0] sm:$0xff] }
 0x12c   :  { %v196_v4 = vadd.f32 %v195_v62, %v110_v57  ;;  %v1675_v8 = vpop.f32.mrb[0].mxu1  ;;  %v396_v57 = vld [vmem:[#allocation8 + $0x3d8] sm:$0xff] }
 0x12d   :  { %v266_v14 = vpop.f32.mrb[1].mxu1  ;;  %v269_v15 = vmax.f32 %v194_v61, 0.0  ;;  %v398_v61 = vld [vmem:[#allocation8 + $0x3e8] sm:$0xff]  ;;  %v400_v62 = vld [vmem:[#allocation8 + $0x3f8] sm:$0xff] }
 0x12e   :  { %v270_v9 = vmax.f32 %v196_v4, 0.0  ;;  %v267_v21 = vadd.f32 %v266_v14, %v118_v3  ;;  %v1243_v3 = vpack.c.bf16 %v396_v57, %v393_v56  ;;  %v1339_v4 = vpack.c.bf16 %v398_v61, %v395_v60  ;;  %v455_v14 = vld [vmem:[#allocation8 + $0x5b0] sm:$0xff]  ;;  %v424_v45 = vld [vmem:[#allocation8 + $0x4b8] sm:$0xff]  ;;  %v433_v56 = vld [vmem:[#allocation8 + $0x500] sm:$0xff] }
 0x12f   :  { %v1245_v7 = vpack.c.bf16 %v403_v63, %v400_v62  ;;  %v1261_v49 = vpack.c.bf16 %v427_v46, %v424_v45  ;;  %v432_v60 = vld [vmem:[#allocation8 + $0x4f8] sm:$0xff]  ;;  %v439_v62 = vld [vmem:[#allocation8 + $0x530] sm:$0xff]  ;;  %v771_v45 = vld [vmem:[#allocation9 + $0x20] sm:$0xff] }
 0x130   :  { %546 = vmatprep.mubr.f32.mxu0 %v270_v9  ;;  %688 = vmatprep.mubr.f32.mxu1 %v270_v9  ;;  %v272_v25 = vmax.f32 %v267_v21, 0.0  ;;  %v1341_v9 = vpack.c.bf16 %v452_v2, %v449_v1  ;;  %v1249_v21 = vpack.c.bf16 %v409_v13, %v406_v12  ;;  %v436_v61 = vld [vmem:[#allocation8 + $0x518] sm:$0xff]  ;;  %v435_v2 = vld [vmem:[#allocation8 + $0x510] sm:$0xff]  ;;  %v772_v46 = vld [vmem:[#allocation9 + $0x28] sm:$0xff] }
 0x131   :  { %547 = vmatmul.mubr.f32.vlgmr.msra.gmra.mrb[2].mxu0 %v269_v15  ;;  %689 = vmatmul.mubr.f32.vlgmr.msra.gmra.mrb[2].mxu1 %v269_v15  ;;  %v458_v15 = vld [vmem:[#allocation8 + $0x5c8] sm:$0xff]  ;;  %v1269_v1 = vpack.c.bf16 %v439_v62, %v436_v61  ;;  %v451_v12 = vld [vmem:[#allocation8 + $0x590] sm:$0xff] }
 0x132   :  { %1228 = vmatpush1.bf16.msra.mxu0 %v1227_v10  ;;  %1324 = vmatpush3.bf16.msra.mxu1 %v1323_v11  ;;  %v401_v10 = vld [vmem:[#allocation8 + $0x400] sm:$0xff]  ;;  %v404_v11 = vld [vmem:[#allocation8 + $0x418] sm:$0xff]  ;;  %v1345_v22 = vpack.c.bf16 %v458_v15, %v455_v14  ;;  %v447_v15 = vld [vmem:[#allocation8 + $0x570] sm:$0xff] }
 0x133   :  { %1230 = vmatprep.subr.bf16.mxu0 %v1229_v16  ;;  %1326 = vmatprep.subr.bf16.mxu1 %v1325_v17  ;;  %v113_v16 = vsub.s32 2, %v1658_v51  ;;  %v1247_v17 = vpack.c.bf16 %v402_v6, %v399_v5  ;;  %v1343_v18 = vpack.c.bf16 %v404_v11, %v401_v10  ;;  %v445_v5 = vld [vmem:[#allocation8 + $0x560] sm:$0xff]  ;;  %v444_v10 = vld [vmem:[#allocation8 + $0x558] sm:$0xff]  ;;  %v776_v61 = vld [vmem:[#allocation9 + $0x48] sm:$0xff] }
 0x134   :  { %758 = vmatprep.mubr.f32.mxu1 %v272_v25  ;;  %617 = vmatprep.mubr.f32.mxu0 %v272_v25  ;;  %v412_v25 = vld [vmem:[#allocation8 + $0x458] sm:$0xff]  ;;  %v793_v62 = vld [vmem:[#allocation9 + $0xd0] sm:$0xff]  ;;  %v803_v51 = vld [vmem:[#allocation9 + $0x120] sm:$0xff] }
 0x135   :  { %v114_v29 = vrot.slane %v1664_v53, %v113_v16  ;;  %v1255_v53 = vpack.c.bf16 %v414_v35, %v411_v32  ;;  %v448_v11 = vld [vmem:[#allocation8 + $0x578] sm:$0xff]  ;;  %v784_v32 = vld [vmem:[#allocation9 + $0x88] sm:$0xff] }
 0x136   :  { %1232 = vmatpush1.bf16.msra.mxu0 %v1231_v26  ;;  %1328 = vmatpush3.bf16.msra.mxu1 %v1327_v27  ;;  %v415_v26 = vld [vmem:[#allocation8 + $0x470] sm:$0xff]  ;;  %v461_v27 = vld [vmem:[#allocation8 + $0x5e0] sm:$0xff]  ;;  %v1277_v14 = vpack.c.bf16 %v451_v12, %v448_v11  ;;  %v768_v35 = vld [vmem:[#allocation9 + $0x8] sm:$0xff] }
 0x137   :  { %1234 = vmatprep.subr.bf16.mxu0 %v1233_v30  ;;  %1330 = vmatprep.subr.bf16.mxu1 %v1329_v31  ;;  %v1251_v30 = vpack.c.bf16 %v408_v20, %v405_v19  ;;  %v1347_v31 = vpack.c.bf16 %v410_v24, %v407_v23  ;;  %v1253_v33 = vpack.c.bf16 %v415_v26, %v412_v25  ;;  %v457_v19 = vld [vmem:[#allocation8 + $0x5c0] sm:$0xff]  ;;  %v456_v23 = vld [vmem:[#allocation8 + $0x5b8] sm:$0xff]  ;;  %v463_v25 = vld [vmem:[#allocation8 + $0x5f0] sm:$0xff] }
 0x138   :  { %v1349_v34 = vpack.c.bf16 %v464_v28, %v461_v27  ;;  %v1682_v40 = vadd.f32 %v1675_v8, %v114_v29  ;;  %v423_v8 = vld [vmem:[#allocation8 + $0x4b0] sm:$0xff]  ;;  %v460_v24 = vld [vmem:[#allocation8 + $0x5d8] sm:$0xff]  ;;  %v462_v29 = vld [vmem:[#allocation8 + $0x5e8] sm:$0xff] }
 0x139   :  { %v1285_v27 = vpack.c.bf16 %v463_v25, %v460_v24  ;;  %v459_v28 = vld [vmem:[#allocation8 + $0x5d0] sm:$0xff]  ;;  %v780_v11 = vld [vmem:[#allocation9 + $0x68] sm:$0xff]  ;;  %v465_v24 = vld [vmem:[%s1718_s5] sm:$0x7] }
 0x13a   :  { %1236 = vmatpush1.bf16.msra.mxu0 %v1235_v38  ;;  %1332 = vmatpush3.bf16.msra.mxu1 %v1331_v39  ;;  %v418_v38 = vld [vmem:[#allocation8 + $0x488] sm:$0xff]  ;;  %v421_v39 = vld [vmem:[#allocation8 + $0x4a0] sm:$0xff]  ;;  %v271_v47 = vmax.f32 %v1682_v40, 0.0  ;;  %v478_v25 = vrot.slane %v465_v24, %v113_v16 }
 0x13b   :  { %1238 = vmatprep.subr.bf16.mxu0 %v1237_v42  ;;  %1334 = vmatprep.subr.bf16.mxu1 %v1333_v43  ;;  %v1257_v42 = vpack.c.bf16 %v421_v39, %v418_v38  ;;  %v417_v43 = vld [vmem:[#allocation8 + $0x480] sm:$0xff]  ;;  %v786_v38 = vld [vmem:[#allocation9 + $0x98] sm:$0xff]  ;;  %v769_v39 = vld [vmem:[#allocation9 + $0x10] sm:$0xff] }
 0x13c   :  { %v1259_v48 = vpack.c.bf16 %v420_v44, %v417_v43  ;;  %v1357_v40 = vpack.c.bf16 %v786_v38, %v785_v37  ;;  %v800_v37 = vld [vmem:[#allocation9 + $0x108] sm:$0xff] }
 0x13e   :  { %1240 = vmatpush1.bf16.msra.mxu0 %v1239_v50  ;;  %1336 = vmatpush3.bf16.msra.mxu1 %v1335_v55  ;;  %v426_v50 = vld [vmem:[#allocation8 + $0x4c8] sm:$0xff] }
 0x13f   :  { %1242 = vmatprep.subr.bf16.mxu0 %v1241_v58  ;;  %1338 = vmatprep.subr.bf16.mxu1 %v1337_v59  ;;  %v430_v55 = vld [vmem:[#allocation8 + $0x4e8] sm:$0xff]  ;;  %v1263_v57 = vpack.c.bf16 %v426_v50, %v423_v8  ;;  %v429_v59 = vld [vmem:[#allocation8 + $0x4e0] sm:$0xff]  ;;  %v773_v50 = vld [vmem:[#allocation9 + $0x30] sm:$0xff] }
 0x140   :  { %v1265_v58 = vpack.c.bf16 %v433_v56, %v430_v55  ;;  %v1267_v63 = vpack.c.bf16 %v432_v60, %v429_v59  ;;  %v774_v55 = vld [vmem:[#allocation9 + $0x38] sm:$0xff]  ;;  %v791_v56 = vld [vmem:[#allocation9 + $0xc0] sm:$0xff] }
 0x141   :  { %v775_v60 = vld [vmem:[#allocation9 + $0x40] sm:$0xff] }
 0x142   :  { %1244 = vmatpush1.bf16.msra.mxu0 %v1243_v3  ;;  %1340 = vmatpush3.bf16.msra.mxu1 %v1339_v4  ;;  %v438_v3 = vld [vmem:[#allocation8 + $0x528] sm:$0xff] }
 0x143   :  { %1246 = vmatprep.subr.bf16.mxu0 %v1245_v7  ;;  %1342 = vmatprep.subr.bf16.mxu1 %v1341_v9  ;;  %v442_v4 = vld [vmem:[#allocation8 + $0x548] sm:$0xff]  ;;  %v1271_v6 = vpack.c.bf16 %v438_v3, %v435_v2  ;;  %v441_v9 = vld [vmem:[#allocation8 + $0x540] sm:$0xff]  ;;  %v777_v3 = vld [vmem:[#allocation9 + $0x50] sm:$0xff] }
 0x144   :  { %v1273_v7 = vpack.c.bf16 %v445_v5, %v442_v4  ;;  %v1275_v13 = vpack.c.bf16 %v444_v10, %v441_v9  ;;  %v778_v4 = vld [vmem:[#allocation9 + $0x58] sm:$0xff]  ;;  %v795_v5 = vld [vmem:[#allocation9 + $0xe0] sm:$0xff] }
 0x145   :  { %v779_v10 = vld [vmem:[#allocation9 + $0x60] sm:$0xff] }
 0x146   :  { %1248 = vmatpush1.bf16.msra.mxu0 %v1247_v17  ;;  %1344 = vmatpush3.bf16.msra.mxu1 %v1343_v18  ;;  %v450_v17 = vld [vmem:[#allocation8 + $0x588] sm:$0xff]  ;;  %v1379_v12 = vpack.c.bf16 %v780_v11, %v779_v10 }
 0x147   :  { %1250 = vmatprep.subr.bf16.mxu0 %v1249_v21  ;;  %1346 = vmatprep.subr.bf16.mxu1 %v1345_v22  ;;  %v454_v18 = vld [vmem:[#allocation8 + $0x5a8] sm:$0xff]  ;;  %v1279_v20 = vpack.c.bf16 %v450_v17, %v447_v15  ;;  %v453_v22 = vld [vmem:[#allocation8 + $0x5a0] sm:$0xff]  ;;  %v781_v17 = vld [vmem:[#allocation9 + $0x70] sm:$0xff] }
 0x148   :  { %v1281_v21 = vpack.c.bf16 %v457_v19, %v454_v18  ;;  %v1283_v26 = vpack.c.bf16 %v456_v23, %v453_v22  ;;  %v782_v18 = vld [vmem:[#allocation9 + $0x78] sm:$0xff] }
 0x149   :  { %v1383_v19 = vpack.c.bf16 %v782_v18, %v781_v17 }
 0x14a   :  { %1252 = vmatpush1.bf16.msra.mxu0 %v1251_v30  ;;  %1348 = vmatpush3.bf16.msra.mxu1 %v1347_v31  ;;  %v1287_v30 = vpack.c.bf16 %v462_v29, %v459_v28  ;;  %v783_v31 = vld [vmem:[#allocation9 + $0x80] sm:$0xff] }
 0x14b   :  { %1254 = vmatprep.subr.bf16.mxu0 %v1253_v33  ;;  %1350 = vmatprep.subr.bf16.mxu1 %v1349_v34  ;;  %v1353_v33 = vpack.c.bf16 %v784_v32, %v783_v31  ;;  %v767_v34 = vld [vmem:[#allocation9] sm:$0xff]  ;;  %v470_v31 = vrot.slane %v465_v24, %v105_v52  ;;  %v474_v32 = vrot.slane %v465_v24, %v109_v54  ;;  %v804_v52 = vld [vmem:[#allocation9 + $0x128] sm:$0xff] }
 0x14c   :  { %v1355_v36 = vpack.c.bf16 %v768_v35, %v767_v34  ;;  %v1392_v54 = vpack.c.bf16 %v804_v52, %v803_v51 }
 0x14e   :  { %1256 = vmatpush1.bf16.msra.mxu0 %v1255_v53  ;;  %1352 = vmatpush3.bf16.msra.mxu1 %v1351_v41  ;;  %v770_v53 = vld [vmem:[#allocation9 + $0x18] sm:$0xff]  ;;  %v787_v41 = vld [vmem:[#allocation9 + $0xa0] sm:$0xff] }
 0x14f   :  { %1258 = vmatprep.subr.bf16.mxu0 %v1257_v42  ;;  %1354 = vmatprep.subr.bf16.mxu1 %v1353_v33  ;;  %v788_v42 = vld [vmem:[#allocation9 + $0xa8] sm:$0xff]  ;;  %v1359_v43 = vpack.c.bf16 %v770_v53, %v769_v39  ;;  %v801_v53 = vld [vmem:[#allocation9 + $0x110] sm:$0xff] }
 0x150   :  { %v1361_v44 = vpack.c.bf16 %v788_v42, %v787_v41  ;;  %v802_v41 = vld [vmem:[#allocation9 + $0x118] sm:$0xff] }
 0x151   :  { %759 = vmatmul.mubr.f32.vlgmr.msra.gmra.mrb[4].mxu1 %v271_v47  ;;  %v1389_v42 = vpack.c.bf16 %v802_v41, %v801_v53 }
 0x152   :  { %1260 = vmatpush1.bf16.msra.mxu0 %v1259_v48  ;;  %1356 = vmatpush3.bf16.msra.mxu1 %v1355_v36  ;;  %v790_v48 = vld [vmem:[#allocation9 + $0xb8] sm:$0xff]  ;;  %v799_v36 = vld [vmem:[#allocation9 + $0x100] sm:$0xff] }
 0x153   :  { %1262 = vmatprep.subr.bf16.mxu0 %v1261_v49  ;;  %1358 = vmatprep.subr.bf16.mxu1 %v1357_v40  ;;  %v1363_v49 = vpack.c.bf16 %v772_v46, %v771_v45  ;;  %v1386_v40 = vpack.c.bf16 %v800_v37, %v799_v36  ;;  %v807_v46 = vld [vmem:[#allocation9 + $0x140] sm:$0xff] }
 0x156   :  { %1264 = vmatpush1.bf16.msra.mxu0 %v1263_v57  ;;  %1360 = vmatpush3.bf16.msra.mxu1 %v1359_v43  ;;  %v792_v57 = vld [vmem:[#allocation9 + $0xc8] sm:$0xff]  ;;  %v805_v43 = vld [vmem:[#allocation9 + $0x130] sm:$0xff] }
 0x157   :  { %1266 = vmatprep.subr.bf16.mxu0 %v1265_v58  ;;  %1362 = vmatprep.subr.bf16.mxu1 %v1361_v44  ;;  %v1367_v58 = vpack.c.bf16 %v774_v55, %v773_v50  ;;  %v1369_v59 = vpack.c.bf16 %v792_v57, %v791_v56  ;;  %v806_v44 = vld [vmem:[#allocation9 + $0x138] sm:$0xff]  ;;  %v811_v50 = vld [vmem:[#allocation9 + $0x160] sm:$0xff]  ;;  %v812_v55 = vld [vmem:[#allocation9 + $0x168] sm:$0xff] }
 0x158   :  { %v1395_v45 = vpack.c.bf16 %v806_v44, %v805_v43  ;;  %v1404_v56 = vpack.c.bf16 %v812_v55, %v811_v50  ;;  %v813_v57 = vld [vmem:[#allocation9 + $0x170] sm:$0xff] }
 0x15a   :  { %1268 = vmatpush1.bf16.msra.mxu0 %v1267_v63  ;;  %1364 = vmatpush3.bf16.msra.mxu1 %v1363_v49  ;;  %v794_v63 = vld [vmem:[#allocation9 + $0xd8] sm:$0xff]  ;;  %v809_v49 = vld [vmem:[#allocation9 + $0x150] sm:$0xff] }
 0x15b   :  { %1270 = vmatprep.subr.bf16.mxu0 %v1269_v1  ;;  %v1371_v1 = vpack.c.bf16 %v776_v61, %v775_v60  ;;  %v1373_v2 = vpack.c.bf16 %v794_v63, %v793_v62 }
 0x15e   :  { %1272 = vmatpush1.bf16.msra.mxu0 %v1271_v6  ;;  %v796_v6 = vld [vmem:[#allocation9 + $0xe8] sm:$0xff] }
 0x15f   :  { %1274 = vmatprep.subr.bf16.mxu0 %v1273_v7  ;;  %v1375_v7 = vpack.c.bf16 %v778_v4, %v777_v3  ;;  %v1377_v9 = vpack.c.bf16 %v796_v6, %v795_v5  ;;  %v964_v6 = vstv %s1713_s0 }
 0x162   :  { %1276 = vmatpush1.bf16.msra.mxu0 %v1275_v13  ;;  %v797_v13 = vld [vmem:[#allocation9 + $0xf0] sm:$0xff] }
 0x163   :  { %1278 = vmatprep.subr.bf16.mxu0 %v1277_v14  ;;  %v798_v14 = vld [vmem:[#allocation9 + $0xf8] sm:$0xff] }
 0x164   :  { %v1381_v15 = vpack.c.bf16 %v798_v14, %v797_v13 }
 0x166   :  { %1280 = vmatpush1.bf16.msra.mxu0 %v1279_v20  ;;  %v1558_v20 = vmov 0.0|0.0  }
 0x167   :  { %1282 = vmatprep.subr.bf16.mxu0 %v1281_v21 }
 0x16a   :  { %1284 = vmatpush1.bf16.msra.mxu0 %v1283_v26 }
 0x16b   :  { %1286 = vmatprep.subr.bf16.mxu0 %v1285_v27 }
 0x16e   :  { %1288 = vmatpush1.bf16.msra.mxu0 %v1287_v30 }
 0x171   :  { %618 = vmatmul.mubr.f32.vlgmr.msra.gmra.mrb[2].mxu0 %v271_v47  ;;  %v789_v47 = vld [vmem:[#allocation9 + $0xb0] sm:$0xff] }
 0x172   :  { %v1365_v8 = vpack.c.bf16 %v790_v48, %v789_v47  ;;  %v808_v47 = vld [vmem:[#allocation9 + $0x148] sm:$0xff] }
 0x173   :  { %v1398_v48 = vpack.c.bf16 %v808_v47, %v807_v46 }
 0x174   :  { %1366 = vmatprep.subr.bf16.mxu1 %v1365_v8  ;;  %v810_v8 = vld [vmem:[#allocation9 + $0x158] sm:$0xff] }
 0x175   :  { %1368 = vmatpush3.bf16.msra.mxu1 %v1367_v58  ;;  %v814_v58 = vld [vmem:[#allocation9 + $0x178] sm:$0xff] }
 0x176   :  { %1370 = vmatprep.subr.bf16.mxu1 %v1369_v59  ;;  %v1407_v59 = vpack.c.bf16 %v814_v58, %v813_v57 }
 0x179   :  { %1372 = vmatpush3.bf16.msra.mxu1 %v1371_v1  ;;  %v987_v1 = vld [vmem:[%s1720_s7] ss:$0 sm:$0xff] }
 0x17a   :  { %1374 = vmatprep.subr.bf16.mxu1 %v1373_v2 }
 0x17d   :  { %1376 = vmatpush3.bf16.msra.mxu1 %v1375_v7 }
 0x17e   :  { %1378 = vmatprep.subr.bf16.mxu1 %v1377_v9 }
 0x181   :  { %1380 = vmatpush3.bf16.msra.mxu1 %v1379_v12 }
 0x182   :  { %1382 = vmatprep.subr.bf16.mxu1 %v1381_v15 }
 0x185   :  { %1384 = vmatpush3.bf16.msra.mxu1 %v1383_v19 }
 0x186   :  { %1385 = vmatprep.subr.bf16.mxu1 %v1558_v20 }
 0x204   :  { %v1020_v21 = vpop.f32.mrb[2].mxu1 }
 0x205   :  { %v1021_v22 = vpop.f32.mrb[3].mxu1 }
 0x206   :  { %v1022_v23 = vadd.f32 %v1021_v22, %v1020_v21 }
 0x208   :  { %v691_v28 = vadd.f32 %v1022_v23, %v478_v25 }
 0x224   :  { %v1055_v26 = vpop.f32.mrb[4].mxu1 }
 0x225   :  { %v1056_v27 = vpop.f32.mrb[5].mxu1 }
 0x226   :  { %v1057_v29 = vadd.f32 %v1056_v27, %v1055_v26 }
 0x228   :  { %v761_v30 = vadd.f32 %v1057_v29, %v691_v28 }
 0x22a   :  { %v766_v60 = vmax.f32 %v761_v30, 0.0 }
 0x244   :  { %v619_v33 = vpop.f32.mrb[2].mxu0 }
 0x245   :  { %v1409_v34 = vadd.f32 %v619_v33, %v470_v31  ;;  %v621_v35 = vpop.f32.mrb[3].mxu0 }
 0x246   :  { %v1410_v38 = vadd.f32 %v621_v35, %v474_v32 }
 0x247   :  { %v764_v16 = vmax.f32 %v1409_v34, 0.0 }
 0x248   :  { %v765_v39 = vmax.f32 %v1410_v38, 0.0 }
 0x24a   :  { %886 = vmatprep.mubr.f32.mxu1 %v765_v39 }
 0x24b   :  { %887 = vmatmul.mubr.f32.vlgmr.msra.gmra.mrb[6].mxu1 %v764_v16 }
 0x24c   :  { %1387 = vmatpush3.bf16.msra.mxu1 %v1386_v40  ;;  %1142 = vmatprep.mubr.msk.f32.mxu1 %vm1559_vm1, %v1557_v0  ;;  %v1401_v0 = vpack.c.bf16 %v810_v8, %v809_v49 }
 0x24d   :  { %1388 = vmatprep.subr.bf16.mxu1 %v1558_v20 }
 0x250   :  { %1390 = vmatpush3.bf16.msra.mxu1 %v1389_v42 }
 0x251   :  { %1391 = vmatprep.subr.bf16.mxu1 %v1558_v20 }
 0x254   :  { %1393 = vmatpush3.bf16.msra.mxu1 %v1392_v54 }
 0x255   :  { %1394 = vmatprep.subr.bf16.mxu1 %v1558_v20 }
 0x258   :  { %1396 = vmatpush3.bf16.msra.mxu1 %v1395_v45 }
 0x259   :  { %1397 = vmatprep.subr.bf16.mxu1 %v1558_v20 }
 0x25c   :  { %1399 = vmatpush3.bf16.msra.mxu1 %v1398_v48 }
 0x25d   :  { %1400 = vmatprep.subr.bf16.mxu1 %v1558_v20 }
 0x260   :  { %1402 = vmatpush3.bf16.msra.mxu1 %v1401_v0 }
 0x261   :  { %1403 = vmatprep.subr.bf16.mxu1 %v1558_v20 }
 0x264   :  { %1405 = vmatpush3.bf16.msra.mxu1 %v1404_v56 }
 0x265   :  { %1406 = vmatprep.subr.bf16.mxu1 %v1558_v20 }
 0x268   :  { %1408 = vmatpush3.bf16.msra.mxu1 %v1407_v59 }
 0x26b   :  { %1143 = vmatmul.mubr.f32.vlgmr.msra.gmra.mrb[8].mxu1 %v766_v60 }
 0x31e   :  { %v1090_v61 = vpop.f32.mrb[6].mxu1 }
 0x31f   :  { %v1091_v62 = vpop.f32.mrb[7].mxu1 }
 0x320   :  { %v1092_v63 = vadd.f32 %v1091_v62, %v1090_v61 }
 0x322   :  { %v889_v2 = vadd.f32 %v1092_v63, %v987_v1 }
 0x33e   :  { %v958_v3 = vpop.f32.mrb[8].mxu1 }
 0x33f   :  { %v959_v4 = vadd.f32 %v958_v3, %v889_v2  ;;  %v1144_v5 = vpop.f32.mrb[9].mxu1 }
 0x341   :  { %1427 = vtanh.f32 %v959_v4 }
 0x34b   :  { %v1428_v7 = vpop.eup %1427 }
 0x34c   :  { %v965_v9 = vmul.f32 %v1428_v7, %v964_v6 }
 0x34e   :  { %967 = vst.msk [vmem:[#allocation11] sm:$0xff] %vm966_vm2, %v965_v9 }
 0x34f   :  { %1528 = shalt.err (!%p1525_p8)
}
 0x350   :  { %s1529_s19 = scalar_lea.hbm %s1721_s8, 128 }
 0x351   :  { %p1530_p9 = scmp.ne.s32.totalorder %s1721_s8, %s1529_s19  ;;  %p1533_p10 = scmp.lt.u32.totalorder %s1529_s19, %s1721_s8 }
 0x353   :  { %p1535_p11 = pnand %p1533_p10, %p1530_p9 }
 0x355   :  { %1538 = shalt.err (!%p1535_p11)
}
 0x356   :  { %977 = dma.vmem_to_hbm [thread:$0]  %s975_s17, 128, %s1721_s8, [#allocation5]  }
 0x357   :  { %1545 = dma.done.wait [#allocation5], 128  }
 0x358   :  { %1546 = vsyncadd [#allocation5], 4294967168 }
 0x359   :  { %981 = vsyncpa [#allocation4], 1 }
 0x35a   :  { %982 = vsyncpa [#allocation7], 1 }
 0x35b   :  { %983 = vsyncpa [#allocation10], 1 }
 0x35c   :  { %984 = vsyncpa [#allocation5], 1 }

</bundles_post_ra>
